<compile_context>
chip_gen: v5e
topology: v5e:2x2
jax: 0.10.0
libtpu: 0.0.40
codegen_flags: <defaults>
</compile_context>

<pallas_src>
import jax
import jax.numpy as jnp
from jax.experimental import pallas as pl
from jax.experimental.pallas import tpu as pltpu


def _attender_kernel(k_ref, q_ref, v_ref, o_ref):
    """One grid step == one block of bt batch elements (batched einsums).

    k_ref: (bt, n_keys,    kq)        bf16 (MXU input)
    q_ref: (bt, n_queries, kq)        bf16
    v_ref: (bt, n_keys,    out_size)  bf16  -- values with the resizer W pre-folded
    o_ref: (bt, n_queries*out_size)         -- lane-dense flattened output slab
    """
    q = q_ref[...]
    k = k_ref[...]

    # score(): dot-product logits. Contract on the shared feature dim directly
    # (no explicit .T -> no per-step XLU transpose); f32 accumulation on the MXU.
    # TODO(synk): at large bt each grid step issues ~2*bt tiny MXU pushes; if the
    #             bundle dump shows the vector-extended (vmatmul) slot binding,
    #             move the smaller of the two contractions to VPU mul+reduce.
    logits = jnp.einsum("bqd,bkd->bqk", q, k,
                        preferred_element_type=jnp.float32)

    # logits_to_attn(): softmax over the keys axis (is_normalize=True), kept in f32
    # on the VPU/EUP (v5e has no bf16 VPU/EUP, so do NOT downcast this block).
    m = jnp.max(logits, axis=-1, keepdims=True)
    e = jnp.exp(logits - m)
    denom = jnp.sum(e, axis=-1, keepdims=True)
    attn = e * pl.reciprocal(denom, approx=True)   # EUP vrcp slot; VALU stays free

    # dropout(p=0) -> identity (no-op).

    # context = bmm(attn, values) with the resizer Linear already folded into v_ref,
    # so this single MXU matmul directly yields the final (bt, n_q, out_size) context.
    ctx = jnp.einsum("bqk,bko->bqo", attn.astype(v_ref.dtype), v_ref[...],
                     preferred_element_type=jnp.float32)

    bt, nq, od = ctx.shape
    # Store as a lane-dense (bt, n_q*out_size) slab: out_size alone (16) would only
    # use 12.5% of each 128-wide vector store (masked vst).
    o_ref[...] = ctx.reshape(bt, nq * od).astype(o_ref.dtype)


def _round_up(x, m):
    return (x + m - 1) // m * m


def _padded_tile_bytes(rows, cols):
    """Conservative VMEM footprint of one (rows, cols) slice under (8,128) tiling
    (4 B/padded-elem upper-bounds both f32 and sublane-packed bf16)."""
    return _round_up(max(rows, 1), 8) * _round_up(max(cols, 1), 128) * 4


def _pick_batch_block(batch, per_elem_bytes, block_budget_bytes=8 << 20, max_bt=1024):
    """Batch-block size.

    Small batches collapse into a single block. Larger batches get the biggest
    block that (a) keeps the single-buffered block set under `block_budget_bytes`
    (the pipeline double-buffers, so resident VMEM ~= 2x this + temporaries;
    sized to fit v7x's 64 MiB VMEM with headroom and is generous on v5e/v6e's
    128 MiB), (b) is a multiple of 8 so the 2-D output block stays legal under
    the (8,128) rule, and (c) leaves the grid >= 2 steps so the "parallel" axis
    can shard across v7x's two TensorCores and the pipeline has work to overlap.
    """
    if batch <= 16:
        return batch
    cap = max(8, min(max_bt, block_budget_bytes // max(per_elem_bytes, 1)))
    cap -= cap % 8
    half = _round_up((batch + 1) // 2, 8)
    return max(8, min(cap, half))


def base_attender(keys, queries, values, resizer_w=None, resizer_b=None,
                  compute_dtype=jnp.bfloat16):
    """keys: (B, n_keys, kq), queries: (B, n_q, kq), values: (B, n_keys, v)
    resizer_w: (out_size, value_size) like nn.Linear.weight (None if value==out size)
    resizer_b: (out_size,)                                   (None if value==out size)
    """
    B, n_keys, kq = keys.shape
    _, n_q, _ = queries.shape
    out_dtype = queries.dtype

    # Fold the resizer matmul into V outside the kernel (XLA, once per call):
    # (attn @ V) @ W^T == attn @ (V @ W^T). Removes one in-kernel MXU matmul plus
    # the W/b DMAs; out_size <= value_size here so total FLOPs drop too. The bias
    # is added wrapper-side (valid because softmax rows sum to 1).
    if resizer_w is not None:
        v_proj = jnp.einsum("bkv,ov->bko", values, resizer_w,
                            preferred_element_type=jnp.float32)
    else:
        v_proj = values
    out_size = v_proj.shape[-1]
    flat_out = n_q * out_size

    # bf16 MXU inputs (halves HBM bytes, v6e/v7x fast path); f32 accumulation and
    # f32 softmax inside the kernel.
    k_in = keys.astype(compute_dtype)
    q_in = queries.astype(compute_dtype)
    v_in = v_proj.astype(compute_dtype)

    # Big batch blocks: amortize the ~0.35 us per-grid-step overhead and the tiny
    # DMAs that dominated at bt<=16, capped by a VMEM budget that is safe on every
    # generation (v7x 64 MiB ... v5e/v6e 128 MiB).
    per_elem = (_padded_tile_bytes(n_keys, kq)
                + _padded_tile_bytes(n_q, kq)
                + _padded_tile_bytes(n_keys, out_size)
                + _padded_tile_bytes(1, flat_out))
    bt = _pick_batch_block(B, per_elem)

    # Pad the batch up to a multiple of the block (zero rows -> uniform softmax over
    # zero values -> zero context; sliced off below). Replaces the old whole-batch
    # fallback that produced grid=(1,) (idle v7x TensorCore) and unbounded VMEM for
    # awkward batch sizes.
    b_pad = _round_up(B, bt)
    if b_pad != B:
        pad = ((0, b_pad - B), (0, 0), (0, 0))
        k_in = jnp.pad(k_in, pad)
        q_in = jnp.pad(q_in, pad)
        v_in = jnp.pad(v_in, pad)

    grid = (b_pad // bt,)

    # TODO(synk): feedback also suggests presenting K/Q/V as lane-dense 2-D slabs
    #             (B, n*d) and reshaping inside the kernel; the 3-D blocks used here
    #             are fully contiguous HBM reads, so the remaining cost is VMEM/vreg
    #             padding only. The lane-splitting (bt, n*d)->(bt, n, d) reshape is
    #             not guaranteed to lower on all Mosaic versions, so it is left out
    #             to keep the kernel robust.
    # TODO(synk): if DMA is still exposed on v5e after the larger blocks, add
    #             pipeline_mode=pl.Buffered(3) on the in_specs (re-check v7x VMEM).
    # TODO(synk): very long n_keys/n_q would need a tiled online-softmax (flash)
    #             variant; at these shapes whole-sequence-per-step is optimal.
    out_flat = pl.pallas_call(
        _attender_kernel,
        out_shape=jax.ShapeDtypeStruct((b_pad, flat_out), out_dtype),
        grid_spec=pltpu.PrefetchScalarGridSpec(
            num_scalar_prefetch=0,
            grid=grid,
            in_specs=[
                pl.BlockSpec((bt, n_keys, kq), lambda b: (b, 0, 0)),
                pl.BlockSpec((bt, n_q, kq), lambda b: (b, 0, 0)),
                pl.BlockSpec((bt, n_keys, out_size), lambda b: (b, 0, 0)),
            ],
            out_specs=pl.BlockSpec((bt, flat_out), lambda b: (b, 0)),
        ),
        compiler_params=pltpu.CompilerParams(
            dimension_semantics=("parallel",),
            # Past the 16/32 MiB scoped defaults (v5e/v6e) so the bigger
            # double-buffered blocks are accepted; still well under v7x's
            # 64 MiB physical VMEM.
            vmem_limit_bytes=48 * 1024 * 1024,
        ),
    )(k_in, q_in, v_in)

    out = out_flat[:B].reshape(B, n_q, out_size)
    if resizer_b is not None:
        out = out + resizer_b.astype(out_dtype)
    return out


def _reference_matched(keys, queries, values, resizer_w, resizer_b,
                       compute_dtype=jnp.bfloat16):
    """Precision-matched reference (same bf16 MXU inputs, f32 accumulation)."""
    if resizer_w is not None:
        v_proj = jnp.einsum("bkv,ov->bko", values, resizer_w,
                            preferred_element_type=jnp.float32).astype(compute_dtype)
    else:
        v_proj = values.astype(compute_dtype)
    logits = jnp.einsum("bqd,bkd->bqk", queries.astype(compute_dtype),
                        keys.astype(compute_dtype),
                        preferred_element_type=jnp.float32)
    attn = jax.nn.softmax(logits, axis=-1)
    ctx = jnp.einsum("bqk,bko->bqo", attn.astype(compute_dtype), v_proj,
                     preferred_element_type=jnp.float32)
    if resizer_b is not None:
        ctx = ctx + resizer_b
    return ctx


if __name__ == "__main__":
    # Small shapes consistent with the module's forward signature.
    B, n_keys, n_queries = 2, 8, 8
    kq_size, value_size, out_size = 32, 32, 16  # value_size != out_size -> resizer path

    key = jax.random.PRNGKey(0)
    k1, k2, k3, k4, k5, k6 = jax.random.split(key, 6)

    keys_arr = jax.random.normal(k1, (B, n_keys, kq_size), dtype=jnp.float32)
    queries = jax.random.normal(k2, (B, n_queries, kq_size), dtype=jnp.float32)
    values = jax.random.normal(k3, (B, n_keys, value_size), dtype=jnp.float32)

    # Deterministic nn.Linear(value_size, out_size) params (uniform like PyTorch default).
    bound = 1.0 / (value_size ** 0.5)
    resizer_w = jax.random.uniform(k4, (out_size, value_size), minval=-bound, maxval=bound)
    resizer_b = jax.random.uniform(k5, (out_size,), minval=-bound, maxval=bound)

    out = base_attender(keys_arr, queries, values, resizer_w, resizer_b)
    out = jax.block_until_ready(out)
    assert out.shape == (B, n_queries, out_size)

    # Precision-matched reference -> tight check.
    ref_matched = _reference_matched(keys_arr, queries, values, resizer_w, resizer_b)
    assert jnp.allclose(out, ref_matched, atol=1e-2, rtol=1e-2)

    # Full-precision f32 module reference -> loose sanity check on the semantics
    # (bf16 matmul inputs introduce small, expected numerical deltas).
    logits_f32 = jnp.einsum("bqd,bkd->bqk", queries, keys_arr)
    attn_f32 = jax.nn.softmax(logits_f32, axis=-1)
    ctx_f32 = jnp.einsum("bqk,bkv->bqv", attn_f32, values)
    ref_f32 = ctx_f32 @ resizer_w.T + resizer_b
    assert jnp.allclose(out, ref_f32, atol=1e-1, rtol=1e-1)

    # Exercise the multi-block + batch-padding path (B > 16, not a multiple of bt):
    # picks bt=24, pads 42 -> 48, grid=(2,) so both v7x TensorCores get a block.
    B2 = 42
    keys2 = jax.random.normal(k6, (B2, n_keys, kq_size), dtype=jnp.float32)
    queries2 = jax.random.normal(k1, (B2, n_queries, kq_size), dtype=jnp.float32)
    values2 = jax.random.normal(k2, (B2, n_keys, value_size), dtype=jnp.float32)
    out2 = jax.block_until_ready(
        base_attender(keys2, queries2, values2, resizer_w, resizer_b))
    assert out2.shape == (B2, n_queries, out_size)
    ref2 = _reference_matched(keys2, queries2, values2, resizer_w, resizer_b)
    assert jnp.allclose(out2, ref2, atol=1e-2, rtol=1e-2)

    print("KERNEL_OK")
</pallas_src>

<mosaic_0001>
module attributes {stable_mosaic.version = 11 : i64} {
  func.func @_attender_kernel(%arg0: i32, %arg1: memref<2x8x32xbf16, #tpu.memory_space<vmem>>, %arg2: memref<2x8x32xbf16, #tpu.memory_space<vmem>>, %arg3: memref<2x8x16xbf16, #tpu.memory_space<vmem>>, %arg4: memref<2x128xf32, #tpu.memory_space<vmem>>) attributes {dimension_semantics = [#tpu.dimension_semantics<parallel>], iteration_bounds = array<i64: 1>, scalar_prefetch = 0 : i64, scratch_operands = 0 : i64, tpu.core_type = #tpu.core_type<tc>, window_params = [{transform_indices = @transform_0, window_bounds = array<i64: 2, 8, 32>}, {transform_indices = @transform_1, window_bounds = array<i64: 2, 8, 32>}, {transform_indices = @transform_2, window_bounds = array<i64: 2, 8, 16>}, {transform_indices = @transform_3, window_bounds = array<i64: 2, 128>}]} {
    %c0 = arith.constant 0 : index
    %c0_0 = arith.constant 0 : index
    %c0_1 = arith.constant 0 : index
    %0 = vector.load %arg2[%c0, %c0_0, %c0_1] : memref<2x8x32xbf16, #tpu.memory_space<vmem>>, vector<2x8x32xbf16>
    %c0_2 = arith.constant 0 : index
    %c0_3 = arith.constant 0 : index
    %c0_4 = arith.constant 0 : index
    %1 = vector.load %arg1[%c0_2, %c0_3, %c0_4] : memref<2x8x32xbf16, #tpu.memory_space<vmem>>, vector<2x8x32xbf16>
    "tpu.trace_start"() <{level = 10 : i32, message = "bqd,bkd->bqk"}> : () -> ()
    %cst = arith.constant dense<0.000000e+00> : vector<2x8x8xf32>
    %2 = tpu.matmul %0, %1, %cst {dimension_numbers = #tpu.dot_dimension_numbers<[2], [2], [1], [1], [0, 0, 0, 1, 1, 1], [0], [0]>} : vector<2x8x32xbf16>, vector<2x8x32xbf16>, vector<2x8x8xf32> -> vector<2x8x8xf32>
    "tpu.trace_stop"() : () -> ()
    %cst_5 = arith.constant dense<0xFF800000> : vector<2x8xf32>
    %3 = vector.multi_reduction <maximumf>, %2, %cst_5 [2] : vector<2x8x8xf32> to vector<2x8xf32>
    %4 = vector.shape_cast %3 : vector<2x8xf32> to vector<2x8x1xf32>
    %5 = vector.broadcast %4 : vector<2x8x1xf32> to vector<2x8x8xf32>
    %6 = arith.subf %2, %5 : vector<2x8x8xf32>
    %7 = math.exp %6 : vector<2x8x8xf32>
    %cst_6 = arith.constant dense<0.000000e+00> : vector<2x8xf32>
    %8 = vector.multi_reduction <add>, %7, %cst_6 [2] : vector<2x8x8xf32> to vector<2x8xf32>
    %9 = vector.shape_cast %8 : vector<2x8xf32> to vector<2x8x1xf32>
    %10 = tpu.reciprocal %9 {approx = true} : vector<2x8x1xf32> -> vector<2x8x1xf32>
    %11 = vector.broadcast %10 : vector<2x8x1xf32> to vector<2x8x8xf32>
    %12 = arith.mulf %7, %11 : vector<2x8x8xf32>
    %13 = arith.truncf %12 : vector<2x8x8xf32> to vector<2x8x8xbf16>
    %c0_7 = arith.constant 0 : index
    %c0_8 = arith.constant 0 : index
    %c0_9 = arith.constant 0 : index
    %14 = vector.load %arg3[%c0_7, %c0_8, %c0_9] : memref<2x8x16xbf16, #tpu.memory_space<vmem>>, vector<2x8x16xbf16>
    "tpu.trace_start"() <{level = 10 : i32, message = "bqk,bko->bqo"}> : () -> ()
    %cst_10 = arith.constant dense<0.000000e+00> : vector<2x8x16xf32>
    %15 = tpu.matmul %13, %14, %cst_10 {dimension_numbers = #tpu.dot_dimension_numbers<[2], [1], [1], [2], [0, 0, 0, 1, 1, 2], [0], [0]>} : vector<2x8x8xbf16>, vector<2x8x16xbf16>, vector<2x8x16xf32> -> vector<2x8x16xf32>
    "tpu.trace_stop"() : () -> ()
    %16 = vector.shape_cast %15 : vector<2x8x16xf32> to vector<2x128xf32>
    %c0_11 = arith.constant 0 : index
    %c0_12 = arith.constant 0 : index
    %17 = vector.load %arg4[%c0_11, %c0_12] : memref<2x128xf32, #tpu.memory_space<vmem>>, vector<2x128xf32>
    tpu.vector_store %arg4[%c0_11, %c0_12], %16 {strides = array<i32>} : memref<2x128xf32, #tpu.memory_space<vmem>>, vector<2x128xf32>,
    return
  }
  func.func @transform_0(%arg0: i32) -> (i32, i32, i32) {
    %c0_i32 = arith.constant 0 : i32
    %c0_i32_0 = arith.constant 0 : i32
    %c0_i32_1 = arith.constant 0 : i32
    return %arg0, %c0_i32, %c0_i32_0 : i32, i32, i32
  }
  func.func @transform_1(%arg0: i32) -> (i32, i32, i32) {
    %c0_i32 = arith.constant 0 : i32
    %c0_i32_0 = arith.constant 0 : i32
    %c0_i32_1 = arith.constant 0 : i32
    return %arg0, %c0_i32, %c0_i32_0 : i32, i32, i32
  }
  func.func @transform_2(%arg0: i32) -> (i32, i32, i32) {
    %c0_i32 = arith.constant 0 : i32
    %c0_i32_0 = arith.constant 0 : i32
    %c0_i32_1 = arith.constant 0 : i32
    return %arg0, %c0_i32, %c0_i32_0 : i32, i32, i32
  }
  func.func @transform_3(%arg0: i32) -> (i32, i32) {
    %c0_i32 = arith.constant 0 : i32
    %c0_i32_0 = arith.constant 0 : i32
    return %arg0, %c0_i32 : i32, i32
  }
}

</mosaic_0001>

<bundles_post_ra>
// kernel: tpu_custom_call.1
= control target key start
LH: loop header
LB: loop body
LE: loop exit
PB: predicated region body
PF: predicated region fallthrough
CT: control target
= control target key end

     0   :  { %8 = vsyncpa [#allocation3], 0  ;;  %s487_s0 = inlined_call_operand.hbm [shape: bf16[2,8,32], index: 0, kind: input, shape index: {}]   ;;  %s488_s1 = inlined_call_operand.hbm [shape: bf16[2,8,32], index: 1, kind: input, shape index: {}]   ;;  %s489_s2 = inlined_call_operand.hbm [shape: bf16[2,8,16], index: 2, kind: input, shape index: {}]   ;;  %s490_s3 = inlined_call_operand.hbm [shape: f32[2,128], index: 3, kind: output, shape index: {}]  }
   0x1   :  { %9 = vsyncpa [#allocation6], 0 }
   0x2   :  { %10 = vsyncpa [#allocation4], 0  ;;  %s28_s14 = sshll.u32 %s488_s1, 4  ;;  %s413_s15 = smov [#allocation5]   ;;  %s29_s14 = int_to_ptr.hbm [resolvable:$true] %s28_s14 }
   0x3   :  { %s30_s16 = sshll.u32 %s413_s15, 4  ;;  %s15_s19 = sshll.u32 %s487_s0, 4  ;;  %s31_s16 = int_to_ptr.vmem [resolvable:$true] %s30_s16  ;;  %s16_s19 = int_to_ptr.hbm [resolvable:$true] %s15_s19 }
   0x4   :  { %s414_s20 = smov 64   ;;  %s415_s21 = smov 4  }
   0x5   :  { %36 = dma.hbm_to_vmem [thread:$0]  %s29_s14, 128, %s31_s16, [#allocation6], %s414_s20, %s414_s20, %s415_s21  }
   0x6   :  { %s416_s22 = smov [#allocation2]   ;;  %s41_s1 = sshll.u32 %s489_s2, 4  ;;  %s42_s1 = int_to_ptr.hbm [resolvable:$true] %s41_s1 }
   0x7   :  { %s17_s23 = sshll.u32 %s416_s22, 4  ;;  %s417_s26 = smov [#allocation7]   ;;  %s18_s23 = int_to_ptr.vmem [resolvable:$true] %s17_s23 }
   0x8   :  { %23 = dma.hbm_to_vmem [thread:$0]  %s16_s19, 128, %s18_s23, [#allocation3], %s414_s20, %s414_s20, %s415_s21  }
   0x9   :  { %s43_s27 = sshll.u32 %s417_s26, 4  ;;  %s44_s27 = int_to_ptr.vmem [resolvable:$true] %s43_s27 }
   0xa   :  { %49 = dma.hbm_to_vmem [thread:$0]  %s42_s1, 128, %s44_s27, [#allocation6], %s414_s20, %s414_s20, %s415_s21  }
   0xb   :  { %407 = dma.done.wait [#allocation3], 128  }
   0xc   :  { %408 = vsyncadd [#allocation3], 4294967168 }
   0xd   :  { %409 = dma.done.wait [#allocation6], 256  }
   0xe   :  { %410 = vsyncadd [#allocation6], 4294967040  ;;  %vm67_vm0 = vcmask 261120   ;;  %v65_v0 = vld [vmem:[#allocation2] sm:$0xf]  ;;  %vm106_vm1 = vcmask 64512  }
   0xf   :  { %v66_v1 = vld [vmem:[#allocation2 + $0x4] sm:$0xf]  ;;  %v72_v2 = vsel %vm67_vm0, %v65_v0, 0  ;;  %v63_v4 = vld [vmem:[#allocation5] sm:$0xf]  ;;  %vm136_vm2 = vcmask 1043456  }
  0x10   :  { %v91_v3 = vsel %vm67_vm0, %v66_v1, 0  ;;  %81 = vmatpush.bf16.xpose.msra.mxu0 %v72_v2  ;;  %v64_v5 = vld [vmem:[#allocation5 + $0x4] sm:$0xf]  ;;  %v132_v22 = vld [vmem:[#allocation7 + $0x4] sm:$0xf]  ;;  %vm173_vm3 = vcmask 1047556  }
  0x11   :  { %100 = vmatpush.bf16.xpose.msra.mxu1 %v91_v3  ;;  %v157_v23 = vsel %vm136_vm2, %v132_v22, 0  ;;  %v131_v24 = vld [vmem:[#allocation7] sm:$0xf]  ;;  %v418_v34 = vmov 1983009808   ;;  %s420_s0 = smov 32  }
  0x12   :  { %166 = vmatpush.bf16.msra.mxu3 %v157_v23  ;;  %v138_v25 = vsel %vm136_vm2, %v131_v24, 0  ;;  %v176_v35 = vunpack.c.l.s4 %v418_v34  ;;  %v419_v41 = vmov 1934713408   ;;  %s421_s2 = smov 48   ;;  %s422_s28 = smov 16   ;;  %vm253_vm4 = vcmask 130048  }
  0x13   :  { %147 = vmatpush.bf16.msra.mxu2 %v138_v25  ;;  %v198_v42 = vunpack.c.l.s4 %v419_v41  ;;  %s423_s29 = smov 96   ;;  %s424_s30 = smov 80   ;;  %vm256_vm5 = vcmask 392192   ;;  %vm258_vm6 = vcmask 523264   ;;  %vm260_vm7 = vcmask 654336  }
  0x14   :  { %v177_v38 = vunpack.c.0.s8 %v176_v35  ;;  %s425_s4 = smov 112   ;;  %vm262_vm8 = vcmask 785408   ;;  %s426_s5 = smov [#allocation8]   ;;  %vm264_vm9 = vcmask 916480  }
  0x15   :  { %v199_v51 = vunpack.c.0.s8 %v198_v42  ;;  %s272_s6 = sshll.u32 %s426_s5, 4  ;;  %s274_s9 = sshll.u32 %s490_s3, 4  ;;  %s273_s6 = int_to_ptr.vmem [resolvable:$true] %s272_s6  ;;  %s275_s9 = int_to_ptr.hbm [resolvable:$true] %s274_s9 }
  0x17   :  { %285 = vmatmul.msk.bf16.vlgmr.msra.gmra.mxu0 %vm67_vm0, %v63_v4 }
  0x18   :  { %286 = vmatmul.msk.bf16.vlgmr.msra.gmra.mxu1 %vm67_vm0, %v64_v5 }
  0x94   :  { %v83_v6 = vpop.f32.mrf.mxu0 }
  0x95   :  { %v102_v7 = vpop.f32.mrf.mxu1  ;;  %v107_v9 = vsel %vm106_vm1, %v83_v6, -inf }
  0x96   :  { %v110_v8 = vsel %vm106_vm1, %v102_v7, -inf }
  0x97   :  { %111 = vmax.xlane.f32.xlu0 %v110_v8 }
  0x9c   :  { %v85_v10 = vpop.f32.mrf.mxu0 }
  0x9d   :  { %v104_v11 = vpop.f32.mrf.mxu1 }
  0x9f   :  { %108 = vmax.xlane.f32.xlu0 %v107_v9 }
 0x10a   :  { %v112_v12 = vpop.xlane.xlu0 %111 }
 0x10b   :  { %v114_v13 = vsub.f32 %v102_v7, %v112_v12 }
 0x10d   :  { %v117_v14 = vmul.f32 1.442695, %v114_v13 }
 0x10f   :  { %303 = vpow2.f32 %v117_v14 }
 0x112   :  { %v109_v15 = vpop.xlane.xlu0 %108 }
 0x113   :  { %v113_v16 = vsub.f32 %v83_v6, %v109_v15 }
 0x115   :  { %v304_v17 = vpop.eup %303  ;;  %v115_v18 = vmul.f32 1.442695, %v113_v16 }
 0x116   :  { %v122_v19 = vsel %vm106_vm1, %v304_v17, 0.0 }
 0x117   :  { %305 = vpow2.f32 %v115_v18  ;;  %123 = vadd.xlane.f32.xlu1 %v122_v19 }
 0x11d   :  { %v306_v20 = vpop.eup %305 }
 0x11e   :  { %v119_v21 = vsel %vm106_vm1, %v306_v20, 0.0 }
 0x11f   :  { %120 = vadd.xlane.f32.xlu1 %v119_v21 }
 0x18a   :  { %v124_v26 = vpop.xlane.xlu1 %123 }
 0x18b   :  { %307 = vrcp.f32 %v124_v26 }
 0x191   :  { %v308_v27 = vpop.eup %307 }
 0x192   :  { %v121_v28 = vpop.xlane.xlu1 %120  ;;  %v128_v29 = vmul.f32 %v308_v27, %v304_v17 }
 0x193   :  { %309 = vrcp.f32 %v121_v28 }
 0x194   :  { %v130_v30 = vpack.c.bf16 %v128_v29, %v128_v29 }
 0x196   :  { %288 = vmatmul.msk.bf16.vlgmr.msra.gmra.mxu3 %vm106_vm1, %v130_v30 }
 0x199   :  { %v310_v31 = vpop.eup %309 }
 0x19a   :  { %v127_v32 = vmul.f32 %v310_v31, %v306_v20 }
 0x19c   :  { %v129_v33 = vpack.c.bf16 %v127_v32, %v127_v32 }
 0x19e   :  { %287 = vmatmul.msk.bf16.vlgmr.msra.gmra.mxu2 %vm106_vm1, %v129_v33 }
 0x219   :  { %v168_v36 = vpop.f32.mrf.mxu3 }
 0x21a   :  { %v183_v37 = vrot.slane %v168_v36, 4  ;;  %v188_v40 = vperm.slane %v168_v36, %v177_v38 }
 0x21c   :  { %v184_v39 = vsel %vm173_vm3, 0.0, %v183_v37  ;;  %v193_v48 = vrot.slane %v188_v40, 4 }
 0x21d   :  { %v192_v43 = vperm.slane %v184_v39, %v177_v38 }
 0x21f   :  { %v205_v52 = vrot.slane %v192_v43, 4 }
 0x221   :  { %v149_v44 = vpop.f32.mrf.mxu2  ;;  %v170_v45 = vpop.f32.mrf.mxu3 }
 0x222   :  { %v172_v46 = vrot.slane %v149_v44, 4  ;;  %v178_v47 = vperm.slane %v149_v44, %v177_v38 }
 0x224   :  { %v174_v49 = vsel %vm173_vm3, 0.0, %v172_v46  ;;  %v195_v50 = vrot.slane %v178_v47, 4  ;;  %v194_v54 = vsel %vm173_vm3, %v193_v48, %v178_v47 }
 0x225   :  { %v182_v53 = vperm.slane %v174_v49, %v177_v38  ;;  %v200_v59 = vperm.slane %v194_v54, %v199_v51 }
 0x226   :  { %v196_v55 = vsel %vm173_vm3, %v188_v40, %v195_v50 }
 0x227   :  { %v204_v56 = vperm.slane %v196_v55, %v199_v51  ;;  %v206_v57 = vsel %vm173_vm3, %v205_v52, %v182_v53  ;;  %v217_v63 = vrot.slane %v200_v59, 4  ;;  %v207_v0 = vrot.slane %v182_v53, 4 }
 0x228   :  { %v212_v58 = vperm.slane %v206_v57, %v199_v51 }
 0x229   :  { %230 = vrot.lane.b32.xlu2 %v204_v56, %s420_s0  ;;  %v219_v60 = vrot.slane %v204_v56, 4  ;;  %v151_v61 = vpop.f32.mrf.mxu2  ;;  %v218_v1 = vsel %vm173_vm3, 0.0, %v217_v63  ;;  %v208_v2 = vsel %vm173_vm3, %v192_v43, %v207_v0 }
 0x22a   :  { %238 = vrot.lane.b32.xlu1 %v212_v58, %s414_s20  ;;  %v216_v3 = vperm.slane %v208_v2, %v199_v51  ;;  %v221_v4 = vrot.slane %v212_v58, 4 }
 0x22b   :  { %v220_v62 = vsel %vm173_vm3, 0.0, %v219_v60 }
 0x22c   :  { %234 = vrot.lane.b32.xlu0 %v220_v62, %s421_s2  ;;  %v222_v5 = vsel %vm173_vm3, 0.0, %v221_v4  ;;  %v223_v6 = vrot.slane %v216_v3, 4 }
 0x22e   :  { %v224_v7 = vsel %vm173_vm3, 0.0, %v223_v6 }
 0x231   :  { %226 = vrot.lane.b32.xlu2 %v218_v1, %s422_s28 }
 0x239   :  { %246 = vrot.lane.b32.xlu2 %v216_v3, %s423_s29 }
 0x241   :  { %242 = vrot.lane.b32.xlu2 %v222_v5, %s424_s30 }
 0x249   :  { %250 = vrot.lane.b32.xlu2 %v224_v7, %s425_s4 }
 0x283   :  { %v231_v8 = vpop.permute.xlu2 %230 }
 0x28b   :  { %v227_v9 = vpop.permute.xlu2 %226 }
 0x28c   :  { %v254_v11 = vsel %vm253_vm4, %v200_v59, %v227_v9 }
 0x28d   :  { %v255_v14 = vsel %vm67_vm0, %v254_v11, %v231_v8 }
 0x293   :  { %v247_v10 = vpop.permute.xlu2 %246 }
 0x29b   :  { %v243_v12 = vpop.permute.xlu2 %242 }
 0x29c   :  { %v239_v15 = vpop.permute.xlu1 %238 }
 0x29e   :  { %v235_v13 = vpop.permute.xlu0 %234 }
 0x29f   :  { %v257_v16 = vsel %vm256_vm5, %v255_v14, %v235_v13 }
 0x2a0   :  { %v259_v17 = vsel %vm258_vm6, %v257_v16, %v239_v15 }
 0x2a1   :  { %v261_v18 = vsel %vm260_vm7, %v259_v17, %v243_v12 }
 0x2a2   :  { %v263_v19 = vsel %vm262_vm8, %v261_v18, %v247_v10 }
 0x2a3   :  { %v251_v20 = vpop.permute.xlu2 %250 }
 0x2a4   :  { %v265_v21 = vsel %vm264_vm9, %v263_v19, %v251_v20 }
 0x2a5   :  { %266 = vst [vmem:[#allocation8] sm:$0x3] %v265_v21 }
 0x2a6   :  { %277 = dma.vmem_to_hbm [thread:$0]  %s273_s6, 32, %s275_s9, [#allocation4]  }
 0x2a7   :  { %411 = dma.done.wait [#allocation4], 32  }
 0x2a8   :  { %412 = vsyncadd [#allocation4], 4294967264 }
 0x2a9   :  { %282 = vsyncpa [#allocation3], 1 }
 0x2aa   :  { %283 = vsyncpa [#allocation6], 1 }
 0x2ab   :  { %284 = vsyncpa [#allocation4], 1 }

</bundles_post_ra>
